<compile_context>
chip_gen: v5e
topology: v5e:2x2
jax: 0.10.0
libtpu: 0.0.40
codegen_flags: <defaults>
</compile_context>

<pallas_src>
import functools

import jax
import jax.numpy as jnp
from jax.experimental import pallas as pl
from jax.experimental.pallas import tpu as pltpu


def _round_up(x, m):
    return ((x + m - 1) // m) * m


def _vmem_target_bytes():
    """Generation-aware VMEM budget with headroom for compiler scratch."""
    try:
        cap = int(pltpu.get_tpu_info().vmem_capacity_bytes)
    except Exception:
        cap = 64 << 20  # conservative (v7x-sized) default
    # v7x (64 MiB) -> ~54 MiB;  v5e/v6e (128 MiB) -> ~108 MiB
    return max(16 << 20, min(int(cap * 0.85), cap - (10 << 20)))


def _apply_activation(y, act, n_valid):
    """Activation in f32. `n_valid` = true (unpadded) width of the last axis."""
    if act == "relu":
        return jnp.maximum(y, 0.0)
    if act == "leakyrelu":
        return jnp.where(y >= 0.0, y, 0.01 * y)  # torch default negative_slope
    if act == "sigmoid":
        return 1.0 / (1.0 + jnp.exp(-y))
    if act == "softmax":
        if y.shape[-1] != n_valid:
            # Padded lanes must not contribute to the normalisation.
            lane = jax.lax.broadcasted_iota(jnp.int32, y.shape, dimension=y.ndim - 1)
            y = jnp.where(lane < n_valid, y, -1e30)
        m = jnp.max(y, axis=-1, keepdims=True)
        e = jnp.exp(y - m)
        return e / jnp.sum(e, axis=-1, keepdims=True)  # exact: rows sum to 1
    return y  # identity (torch.nn.Identity fallback)


# --------------------------------------------------------------------------
# Fused single-launch path: all layers in one kernel, weights VMEM-resident.
# --------------------------------------------------------------------------
def _fused_mlp_kernel(*refs, n_layers, last_activate, n_valid_last):
    # refs = (x, w0, b0, w1, b1, ..., w_{L-1}, b_{L-1}, out)
    x_ref = refs[0]
    o_ref = refs[-1]
    h = x_ref[...]
    for li in range(n_layers):
        w_ref = refs[1 + 2 * li]
        b_ref = refs[2 + 2 * li]
        # Matmul in the weights' dtype (f32 or bf16), f32 accumulation on MXU.
        y = jnp.dot(h.astype(w_ref.dtype), w_ref[...],
                    preferred_element_type=jnp.float32)
        y = y + b_ref[...]                      # bias + activation in f32 (VPU)
        act = "relu" if li < n_layers - 1 else last_activate
        h = _apply_activation(y, act, n_valid_last)
    o_ref[...] = h.astype(o_ref.dtype)          # lane-dense (128-padded) store


def prepare_mlp_params(params, *, compute_dtype=jnp.bfloat16):
    """One-time padding / casting of (W, b) pairs (hoisted out of forward)."""
    dims = [params[0][0].shape[0]] + [w.shape[1] for (w, _) in params]
    # Output (N) dims padded to 128 for lane-dense stores / MXU shape; the
    # layer-0 K dim stays at its true size so x needs no feature padding.
    dims_pad = [dims[0]] + [_round_up(d, 128) for d in dims[1:]]
    layers = []
    for li, (w, b) in enumerate(params):
        kin, kout = w.shape
        k_pad, n_pad = dims_pad[li], dims_pad[li + 1]
        w_pad = jnp.zeros((k_pad, n_pad), compute_dtype).at[:kin, :kout].set(
            w.astype(compute_dtype))
        b_pad = jnp.zeros((1, n_pad), jnp.float32).at[:, :kout].set(
            b.astype(jnp.float32).reshape(1, kout))
        layers.append((w_pad, b_pad))
    return {"layers": layers, "dims": dims, "dims_pad": dims_pad,
            "compute_dtype": jnp.dtype(compute_dtype)}


_WEIGHT_BUFFERED_OK = None  # cached: does this JAX accept pl.Buffered(1)?


def _const_spec(shape, buffered):
    if buffered:
        return pl.BlockSpec(shape, lambda i: (0, 0), pipeline_mode=pl.Buffered(1))
    return pl.BlockSpec(shape, lambda i: (0, 0))


def _mlp_forward_fused(x, prepared, *, last_activate="relu", tm=None):
    global _WEIGHT_BUFFERED_OK
    layers = prepared["layers"]
    dims, dims_pad = prepared["dims"], prepared["dims_pad"]
    cdtype = prepared["compute_dtype"]
    n_layers = len(layers)
    M, d0 = x.shape
    assert d0 == dims[0], "input width does not match the MLP"

    w_item = cdtype.itemsize
    x_item = jnp.dtype(x.dtype).itemsize
    out_item = x_item                              # output in caller's dtype
    sublane = 8 * (4 // w_item)                    # 8 for f32, 16 for bf16

    vmem_target = _vmem_target_bytes()
    resident_w = sum(w.shape[0] * w.shape[1] * w_item + b.shape[1] * 4
                     for (w, b) in layers)         # Buffered(1): counted 1x
    per_row = (2 * d0 * x_item                     # x tile, double-buffered
               + 2 * dims_pad[-1] * out_item       # out tile, double-buffered
               + 2 * max(dims_pad) * 4)            # live f32 intermediates
    if tm is None:
        tm = min(1024, max(sublane,
                           (vmem_target - resident_w - (4 << 20)) // per_row))
    tm = min(int(tm), _round_up(M, sublane))
    tm = max(sublane, (tm // sublane) * sublane)
    # Keep >= 2 grid steps when the batch allows it so the 'parallel' batch
    # axis can be sharded across both TensorCores on v7x (no cost on 1-TC chips).
    if M > sublane and _round_up(M, tm) // tm < 2:
        tm = max(sublane, _round_up((M + 1) // 2, sublane))
    m_pad = _round_up(M, tm)

    # Only the batch dim may need padding; features keep their true width and
    # dtype (the kernel casts at the first matmul).
    x_in = x if m_pad == M else jnp.zeros((m_pad, d0), x.dtype).at[:M].set(x)

    base_est = (2 * tm * d0 * x_item + 2 * tm * dims_pad[-1] * out_item
                + resident_w + 2 * tm * max(dims_pad) * 4 + (4 << 20))

    kernel = functools.partial(_fused_mlp_kernel, n_layers=n_layers,
                               last_activate=last_activate,
                               n_valid_last=dims[-1])

    def build(buffered):
        extra = 0 if buffered else resident_w      # default pipelining = 2 bufs
        vmem_limit = int(min(max(base_est + extra, 16 << 20), vmem_target))
        in_specs = [pl.BlockSpec((tm, d0), lambda i: (i, 0))]
        for (w, b) in layers:
            in_specs.append(_const_spec(w.shape, buffered))
            in_specs.append(_const_spec(b.shape, buffered))
        return pl.pallas_call(
            kernel,
            out_shape=jax.ShapeDtypeStruct((m_pad, dims_pad[-1]), x.dtype),
            grid_spec=pltpu.PrefetchScalarGridSpec(
                num_scalar_prefetch=0,
                grid=(m_pad // tm,),
                in_specs=in_specs,
                out_specs=pl.BlockSpec((tm, dims_pad[-1]), lambda i: (i, 0)),
            ),
            compiler_params=pltpu.CompilerParams(
                dimension_semantics=("parallel",),
                vmem_limit_bytes=vmem_limit,
            ),
        )

    flat_args = [x_in]
    for (w, b) in layers:
        flat_args += [w, b]

    if _WEIGHT_BUFFERED_OK is None or _WEIGHT_BUFFERED_OK:
        try:
            out_pad = build(buffered=True)(*flat_args)
            _WEIGHT_BUFFERED_OK = True
        except Exception:
            _WEIGHT_BUFFERED_OK = False
            out_pad = build(buffered=False)(*flat_args)
    else:
        out_pad = build(buffered=False)(*flat_args)

    return out_pad[:M, :dims[-1]]


# --------------------------------------------------------------------------
# Tiled per-layer fallback: used when the resident weight set would not fit
# in VMEM (e.g. very wide layers on v7x).  K-reduction axis last, 'arbitrary'.
# --------------------------------------------------------------------------
def _linear_act_kernel(x_ref, w_ref, b_ref, o_ref, acc_ref, *, act, n_valid):
    @pl.when(pl.program_id(2) == 0)
    def _():
        acc_ref[...] = jnp.zeros_like(acc_ref)
    acc_ref[...] += jnp.dot(x_ref[...], w_ref[...],
                            preferred_element_type=jnp.float32)

    @pl.when(pl.program_id(2) == pl.num_programs(2) - 1)
    def _():
        y = acc_ref[...] + b_ref[...]
        o_ref[...] = _apply_activation(y, act, n_valid).astype(o_ref.dtype)


def _pick_tile(total, candidates):
    for c in candidates:
        if total % c == 0:
            return c
    return total


def _mlp_forward_tiled(x, prepared, *, last_activate="relu"):
    layers = prepared["layers"]
    dims = prepared["dims"]
    cdtype = prepared["compute_dtype"]
    n_layers = len(layers)
    M = x.shape[0]
    sublane = 8 * (4 // cdtype.itemsize)
    tm = max(sublane, (min(512, _round_up(M, sublane)) // sublane) * sublane)
    m_pad = _round_up(M, tm)

    h = x.astype(cdtype)
    if m_pad != M:
        h = jnp.zeros((m_pad, dims[0]), cdtype).at[:M].set(h)

    vmem_limit = int(min(_vmem_target_bytes(), 64 << 20))
    for li, (w, b) in enumerate(layers):
        K, N = w.shape
        tk = K if (K % 128 != 0 or K <= 512) else _pick_tile(K, (512, 256, 128))
        tn = _pick_tile(N, (512, 256, 128))
        act = "relu" if li < n_layers - 1 else last_activate
        # Softmax needs a full row; apply it outside the N-tiled kernel.
        kernel_act = act if act != "softmax" else "identity"
        out_dtype = cdtype if li < n_layers - 1 else x.dtype
        kernel = functools.partial(_linear_act_kernel, act=kernel_act,
                                   n_valid=dims[li + 1])
        h = pl.pallas_call(
            kernel,
            out_shape=jax.ShapeDtypeStruct((m_pad, N), out_dtype),
            grid_spec=pltpu.PrefetchScalarGridSpec(
                num_scalar_prefetch=0,
                grid=(m_pad // tm, N // tn, K // tk),
                in_specs=[pl.BlockSpec((tm, tk), lambda i, j, k: (i, k)),
                          pl.BlockSpec((tk, tn), lambda i, j, k: (k, j)),
                          pl.BlockSpec((1, tn), lambda i, j, k: (0, j))],
                out_specs=pl.BlockSpec((tm, tn), lambda i, j, k: (i, j)),
                scratch_shapes=[pltpu.VMEM((tm, tn), jnp.float32)],
            ),
            compiler_params=pltpu.CompilerParams(
                dimension_semantics=("parallel", "parallel", "arbitrary"),
                vmem_limit_bytes=vmem_limit,
            ),
        )(h, w, b)

    out = h[:M, :dims[-1]]
    if last_activate == "softmax":
        out = jax.nn.softmax(out.astype(jnp.float32), axis=-1).astype(x.dtype)
    return out


# --------------------------------------------------------------------------
# Public entry point: dispatch fused vs. tiled based on VMEM residency.
# --------------------------------------------------------------------------
def mlp_forward(x, prepared, *, last_activate="relu", tm=None, force_tiled=False):
    layers = prepared["layers"]
    w_item = prepared["compute_dtype"].itemsize
    resident_w = sum(w.shape[0] * w.shape[1] * w_item + b.shape[1] * 4
                     for (w, b) in layers)
    if force_tiled or resident_w + (8 << 20) > _vmem_target_bytes():
        return _mlp_forward_tiled(x, prepared, last_activate=last_activate)
    return _mlp_forward_fused(x, prepared, last_activate=last_activate, tm=tm)


# --------------------------------------------------------------------------
# Helpers for the demo / self-test.
# --------------------------------------------------------------------------
def init_mlp_params(key, sizes, dtype=jnp.float32):
    """Init mimicking torch.nn.Linear default (U(-1/sqrt(in), 1/sqrt(in)))."""
    params = []
    for s in range(len(sizes) - 1):
        fan_in, fan_out = sizes[s], sizes[s + 1]
        key, kw, kb = jax.random.split(key, 3)
        bound = 1.0 / jnp.sqrt(jnp.float32(fan_in))
        # stored as (in, out) so the kernel does x @ W
        w = jax.random.uniform(kw, (fan_in, fan_out), dtype, -bound, bound)
        b = jax.random.uniform(kb, (1, fan_out), dtype, -bound, bound)
        params.append((w, b))
    return params


def mlp_reference(x, params, *, last_activate="relu"):
    n_layers = len(params)
    for i, (w, b) in enumerate(params):
        y = x @ w + b
        if i < n_layers - 1:
            x = jnp.maximum(y, 0.0)
        else:
            if last_activate == "relu":
                x = jnp.maximum(y, 0.0)
            elif last_activate == "sigmoid":
                x = jax.nn.sigmoid(y)
            elif last_activate == "softmax":
                x = jax.nn.softmax(y, axis=-1)
            elif last_activate == "leakyrelu":
                x = jnp.where(y >= 0, y, 0.01 * y)
            else:
                x = y
    return x


if __name__ == "__main__":
    key = jax.random.PRNGKey(0)
    sizes = [32, 64, 16]          # MLP(sizes=[32, 64, 16]) with defaults
    batch = 256

    kx, kp = jax.random.split(key)
    x = jax.random.normal(kx, (batch, sizes[0]), jnp.float32)
    params = init_mlp_params(kp, sizes, jnp.float32)

    # One-time preparation (padding/casting hoisted out of the forward pass).
    prepared_f32 = prepare_mlp_params(params, compute_dtype=jnp.float32)
    prepared_bf16 = prepare_mlp_params(params)      # bf16 MXU path (default)

    ref = mlp_reference(x, params, last_activate="relu")
    ref_sm = mlp_reference(x, params, last_activate="softmax")

    # 1) fused f32 path, default last_activate='relu'
    out = jax.block_until_ready(mlp_forward(x, prepared_f32, last_activate="relu"))
    assert out.shape == (batch, sizes[-1]) and out.dtype == x.dtype
    assert jnp.allclose(out, ref, atol=1e-5, rtol=1e-5), "f32 relu mismatch"

    # 2) ragged batch (exercises batch padding)
    out_r = jax.block_until_ready(mlp_forward(x[:37], prepared_f32))
    assert jnp.allclose(out_r, ref[:37], atol=1e-5, rtol=1e-5), "ragged mismatch"

    # 3) softmax last activation (exact normalisation, padded-lane masking)
    out_sm = jax.block_until_ready(
        mlp_forward(x, prepared_f32, last_activate="softmax"))
    assert jnp.allclose(out_sm, ref_sm, atol=1e-4, rtol=1e-4), "softmax mismatch"

    # 4) bf16 MXU path (bf16 matmuls, f32 accumulation)
    out_bf = jax.block_until_ready(mlp_forward(x, prepared_bf16))
    assert jnp.allclose(out_bf, ref, atol=3e-2, rtol=3e-2), "bf16 mismatch"

    # 5) K/N-tiled fallback path (forced, to exercise the wide-layer route)
    out_t = jax.block_until_ready(mlp_forward(x, prepared_bf16, force_tiled=True))
    assert jnp.allclose(out_t, ref, atol=3e-2, rtol=3e-2), "tiled mismatch"

    out_tsm = jax.block_until_ready(
        mlp_forward(x, prepared_f32, last_activate="softmax", force_tiled=True))
    assert jnp.allclose(out_tsm, ref_sm, atol=1e-4, rtol=1e-4), "tiled softmax mismatch"

    print("KERNEL_OK")
</pallas_src>

<mosaic_0001>
module attributes {stable_mosaic.version = 11 : i64} {
  func.func @_fused_mlp_kernel(%arg0: i32, %arg1: memref<128x32xf32, #tpu.memory_space<vmem>>, %arg2: memref<32x128xf32, #tpu.memory_space<vmem>>, %arg3: memref<1x128xf32, #tpu.memory_space<vmem>>, %arg4: memref<128x128xf32, #tpu.memory_space<vmem>>, %arg5: memref<1x128xf32, #tpu.memory_space<vmem>>, %arg6: memref<128x128xf32, #tpu.memory_space<vmem>>) attributes {dimension_semantics = [#tpu.dimension_semantics<parallel>], iteration_bounds = array<i64: 2>, scalar_prefetch = 0 : i64, scratch_operands = 0 : i64, tpu.core_type = #tpu.core_type<tc>, window_params = [{transform_indices = @transform_0, window_bounds = array<i64: 128, 32>}, {pipeline_mode = #tpu.pipeline_mode<synchronous>, transform_indices = @transform_1, window_bounds = array<i64: 32, 128>}, {pipeline_mode = #tpu.pipeline_mode<synchronous>, transform_indices = @transform_2, window_bounds = array<i64: 1, 128>}, {pipeline_mode = #tpu.pipeline_mode<synchronous>, transform_indices = @transform_3, window_bounds = array<i64: 128, 128>}, {pipeline_mode = #tpu.pipeline_mode<synchronous>, transform_indices = @transform_4, window_bounds = array<i64: 1, 128>}, {transform_indices = @transform_5, window_bounds = array<i64: 128, 128>}]} {
    %c0 = arith.constant 0 : index
    %c0_0 = arith.constant 0 : index
    %0 = vector.load %arg1[%c0, %c0_0] : memref<128x32xf32, #tpu.memory_space<vmem>>, vector<128x32xf32>
    %c0_1 = arith.constant 0 : index
    %c0_2 = arith.constant 0 : index
    %1 = vector.load %arg2[%c0_1, %c0_2] : memref<32x128xf32, #tpu.memory_space<vmem>>, vector<32x128xf32>
    %cst = arith.constant dense<0.000000e+00> : vector<128x128xf32>
    %2 = tpu.matmul %0, %1, %cst {dimension_numbers = #tpu.dot_dimension_numbers<[1], [0], [0], [1], [0, 0, 1, 1], [], []>} : vector<128x32xf32>, vector<32x128xf32>, vector<128x128xf32> -> vector<128x128xf32>
    %c0_3 = arith.constant 0 : index
    %c0_4 = arith.constant 0 : index
    %3 = vector.load %arg3[%c0_3, %c0_4] : memref<1x128xf32, #tpu.memory_space<vmem>>, vector<1x128xf32>
    %4 = vector.broadcast %3 : vector<1x128xf32> to vector<128x128xf32>
    %5 = arith.addf %2, %4 : vector<128x128xf32>
    %cst_5 = arith.constant 0.000000e+00 : f32
    %6 = vector.broadcast %cst_5 : f32 to vector<128x128xf32>
    %7 = arith.maximumf %5, %6 : vector<128x128xf32>
    %c0_6 = arith.constant 0 : index
    %c0_7 = arith.constant 0 : index
    %8 = vector.load %arg4[%c0_6, %c0_7] : memref<128x128xf32, #tpu.memory_space<vmem>>, vector<128x128xf32>
    %cst_8 = arith.constant dense<0.000000e+00> : vector<128x128xf32>
    %9 = tpu.matmul %7, %8, %cst_8 {dimension_numbers = #tpu.dot_dimension_numbers<[1], [0], [0], [1], [0, 0, 1, 1], [], []>} : vector<128x128xf32>, vector<128x128xf32>, vector<128x128xf32> -> vector<128x128xf32>
    %c0_9 = arith.constant 0 : index
    %c0_10 = arith.constant 0 : index
    %10 = vector.load %arg5[%c0_9, %c0_10] : memref<1x128xf32, #tpu.memory_space<vmem>>, vector<1x128xf32>
    %11 = vector.broadcast %10 : vector<1x128xf32> to vector<128x128xf32>
    %12 = arith.addf %9, %11 : vector<128x128xf32>
    %cst_11 = arith.constant 0.000000e+00 : f32
    %13 = vector.broadcast %cst_11 : f32 to vector<128x128xf32>
    %14 = arith.maximumf %12, %13 : vector<128x128xf32>
    %c0_12 = arith.constant 0 : index
    %c0_13 = arith.constant 0 : index
    %15 = vector.load %arg6[%c0_12, %c0_13] : memref<128x128xf32, #tpu.memory_space<vmem>>, vector<128x128xf32>
    tpu.vector_store %arg6[%c0_12, %c0_13], %14 {strides = array<i32>} : memref<128x128xf32, #tpu.memory_space<vmem>>, vector<128x128xf32>,
    return
  }
  func.func @transform_0(%arg0: i32) -> (i32, i32) {
    %c0_i32 = arith.constant 0 : i32
    %c0_i32_0 = arith.constant 0 : i32
    return %arg0, %c0_i32 : i32, i32
  }
  func.func @transform_1(%arg0: i32) -> (i32, i32) {
    %c0_i32 = arith.constant 0 : i32
    %c0_i32_0 = arith.constant 0 : i32
    %c0_i32_1 = arith.constant 0 : i32
    return %c0_i32, %c0_i32_0 : i32, i32
  }
  func.func @transform_2(%arg0: i32) -> (i32, i32) {
    %c0_i32 = arith.constant 0 : i32
    %c0_i32_0 = arith.constant 0 : i32
    %c0_i32_1 = arith.constant 0 : i32
    return %c0_i32, %c0_i32_0 : i32, i32
  }
  func.func @transform_3(%arg0: i32) -> (i32, i32) {
    %c0_i32 = arith.constant 0 : i32
    %c0_i32_0 = arith.constant 0 : i32
    %c0_i32_1 = arith.constant 0 : i32
    return %c0_i32, %c0_i32_0 : i32, i32
  }
  func.func @transform_4(%arg0: i32) -> (i32, i32) {
    %c0_i32 = arith.constant 0 : i32
    %c0_i32_0 = arith.constant 0 : i32
    %c0_i32_1 = arith.constant 0 : i32
    return %c0_i32, %c0_i32_0 : i32, i32
  }
  func.func @transform_5(%arg0: i32) -> (i32, i32) {
    %c0_i32 = arith.constant 0 : i32
    %c0_i32_0 = arith.constant 0 : i32
    return %arg0, %c0_i32 : i32, i32
  }
}

module attributes {stable_mosaic.version = 11 : i64} {
  func.func @_fused_mlp_kernel(%arg0: i32, %arg1: memref<128x32xf32, #tpu.memory_space<vmem>>, %arg2: memref<32x128xf32, #tpu.memory_space<vmem>>, %arg3: memref<1x128xf32, #tpu.memory_space<vmem>>, %arg4: memref<128x128xf32, #tpu.memory_space<vmem>>, %arg5: memref<1x128xf32, #tpu.memory_space<vmem>>, %arg6: memref<128x128xf32, #tpu.memory_space<vmem>>) attributes {dimension_semantics = [#tpu.dimension_semantics<parallel>], iteration_bounds = array<i64: 2>, scalar_prefetch = 0 : i64, scratch_operands = 0 : i64, tpu.core_type = #tpu.core_type<tc>, window_params = [{transform_indices = @transform_0, window_bounds = array<i64: 128, 32>}, {pipeline_mode = #tpu.pipeline_mode<synchronous>, transform_indices = @transform_1, window_bounds = array<i64: 32, 128>}, {pipeline_mode = #tpu.pipeline_mode<synchronous>, transform_indices = @transform_2, window_bounds = array<i64: 1, 128>}, {pipeline_mode = #tpu.pipeline_mode<synchronous>, transform_indices = @transform_3, window_bounds = array<i64: 128, 128>}, {pipeline_mode = #tpu.pipeline_mode<synchronous>, transform_indices = @transform_4, window_bounds = array<i64: 1, 128>}, {transform_indices = @transform_5, window_bounds = array<i64: 128, 128>}]} {
    %c0 = arith.constant 0 : index
    %c0_0 = arith.constant 0 : index
    %0 = vector.load %arg1[%c0, %c0_0] : memref<128x32xf32, #tpu.memory_space<vmem>>, vector<128x32xf32>
    %c0_1 = arith.constant 0 : index
    %c0_2 = arith.constant 0 : index
    %1 = vector.load %arg2[%c0_1, %c0_2] : memref<32x128xf32, #tpu.memory_space<vmem>>, vector<32x128xf32>
    %cst = arith.constant dense<0.000000e+00> : vector<128x128xf32>
    %2 = tpu.matmul %0, %1, %cst {dimension_numbers = #tpu.dot_dimension_numbers<[1], [0], [0], [1], [0, 0, 1, 1], [], []>} : vector<128x32xf32>, vector<32x128xf32>, vector<128x128xf32> -> vector<128x128xf32>
    %c0_3 = arith.constant 0 : index
    %c0_4 = arith.constant 0 : index
    %3 = vector.load %arg3[%c0_3, %c0_4] : memref<1x128xf32, #tpu.memory_space<vmem>>, vector<1x128xf32>
    %4 = vector.broadcast %3 : vector<1x128xf32> to vector<128x128xf32>
    %5 = arith.addf %2, %4 : vector<128x128xf32>
    %cst_5 = arith.constant 0.000000e+00 : f32
    %6 = vector.broadcast %cst_5 : f32 to vector<128x128xf32>
    %7 = arith.maximumf %5, %6 : vector<128x128xf32>
    %c0_6 = arith.constant 0 : index
    %c0_7 = arith.constant 0 : index
    %8 = vector.load %arg4[%c0_6, %c0_7] : memref<128x128xf32, #tpu.memory_space<vmem>>, vector<128x128xf32>
    %cst_8 = arith.constant dense<0.000000e+00> : vector<128x128xf32>
    %9 = tpu.matmul %7, %8, %cst_8 {dimension_numbers = #tpu.dot_dimension_numbers<[1], [0], [0], [1], [0, 0, 1, 1], [], []>} : vector<128x128xf32>, vector<128x128xf32>, vector<128x128xf32> -> vector<128x128xf32>
    %c0_9 = arith.constant 0 : index
    %c0_10 = arith.constant 0 : index
    %10 = vector.load %arg5[%c0_9, %c0_10] : memref<1x128xf32, #tpu.memory_space<vmem>>, vector<1x128xf32>
    %11 = vector.broadcast %10 : vector<1x128xf32> to vector<128x128xf32>
    %12 = arith.addf %9, %11 : vector<128x128xf32>
    %cst_11 = arith.constant 0.000000e+00 : f32
    %13 = vector.broadcast %cst_11 : f32 to vector<128x128xf32>
    %14 = arith.maximumf %12, %13 : vector<128x128xf32>
    %c0_12 = arith.constant 0 : index
    %c0_13 = arith.constant 0 : index
    %15 = vector.load %arg6[%c0_12, %c0_13] : memref<128x128xf32, #tpu.memory_space<vmem>>, vector<128x128xf32>
    tpu.vector_store %arg6[%c0_12, %c0_13], %14 {strides = array<i32>} : memref<128x128xf32, #tpu.memory_space<vmem>>, vector<128x128xf32>,
    return
  }
  func.func @transform_0(%arg0: i32) -> (i32, i32) {
    %c0_i32 = arith.constant 0 : i32
    %c0_i32_0 = arith.constant 0 : i32
    return %arg0, %c0_i32 : i32, i32
  }
  func.func @transform_1(%arg0: i32) -> (i32, i32) {
    %c0_i32 = arith.constant 0 : i32
    %c0_i32_0 = arith.constant 0 : i32
    %c0_i32_1 = arith.constant 0 : i32
    return %c0_i32, %c0_i32_0 : i32, i32
  }
  func.func @transform_2(%arg0: i32) -> (i32, i32) {
    %c0_i32 = arith.constant 0 : i32
    %c0_i32_0 = arith.constant 0 : i32
    %c0_i32_1 = arith.constant 0 : i32
    return %c0_i32, %c0_i32_0 : i32, i32
  }
  func.func @transform_3(%arg0: i32) -> (i32, i32) {
    %c0_i32 = arith.constant 0 : i32
    %c0_i32_0 = arith.constant 0 : i32
    %c0_i32_1 = arith.constant 0 : i32
    return %c0_i32, %c0_i32_0 : i32, i32
  }
  func.func @transform_4(%arg0: i32) -> (i32, i32) {
    %c0_i32 = arith.constant 0 : i32
    %c0_i32_0 = arith.constant 0 : i32
    %c0_i32_1 = arith.constant 0 : i32
    return %c0_i32, %c0_i32_0 : i32, i32
  }
  func.func @transform_5(%arg0: i32) -> (i32, i32) {
    %c0_i32 = arith.constant 0 : i32
    %c0_i32_0 = arith.constant 0 : i32
    return %arg0, %c0_i32 : i32, i32
  }
}

</mosaic_0001>

<bundles_post_ra>
// kernel: tpu_custom_call.1
= control target key start
LH: loop header
LB: loop body
LE: loop exit
PB: predicated region body
PF: predicated region fallthrough
CT: control target
= control target key end

     0   :  { %10 = vsyncpa [#allocation3], 0  ;;  %s1004_s0 = inlined_call_operand.vmem [shape: f32[256,32], index: 0, kind: input, shape index: {}]   ;;  %s1005_s1 = inlined_call_operand.vmem [shape: f32[32,128], index: 1, kind: input, shape index: {}]   ;;  %s1006_s2 = inlined_call_operand.vmem [shape: f32[1,128], index: 2, kind: input, shape index: {}]   ;;  %s1007_s3 = inlined_call_operand.vmem [shape: f32[128,128], index: 3, kind: input, shape index: {}]   ;;  %s1008_s4 = inlined_call_operand.vmem [shape: f32[1,128], index: 4, kind: input, shape index: {}]   ;;  %s1009_s5 = inlined_call_operand.hbm [shape: f32[256,128], index: 5, kind: output, shape index: {}]  }
   0x1   :  { %12 = vsyncpa [#allocation3 + $0x1], 0  ;;  %s779_s18 = smov 0   ;;  %s781_s19 = smov 0  }
   0x2   :  { %s783_s20 = smov 0   ;;  %s785_s21 = smov 0  }
   0x3 LB: > { %s800_s22 = sadd.s32 4294967295, %s745_s21   ;;  %s575_s23 = sadd.s32 4294967294, %s745_s21   ;;  %s745_s21 = sphi %s785_s21, %s1015_s21   ;;  %s741_s20 = sphi %s783_s20, %s1014_s20   ;;  %s737_s19 = sphi %s781_s19, %s1013_s19   ;;  %s733_s18 = sphi %s779_s18, %s1012_s18  }
   0x4   : > { %s804_s24 = sadd.s32 1, %s745_s21   ;;  %s135_s25 = sadd.s32 1, %s741_s20 }
   0x5   : > { %s132_s26 = ssub.s32 %s745_s21, %s804_s24  ;;  %p145_p0 = scmp.ne.s32.totalorder %s741_s20, %s737_s19 }
   0x6   : > { %p133_p1 = scmp.eq.s32.totalorder %s132_s26, 0  ;;  %p146_p2 = scmp.eq.s32.totalorder %s800_s22, 1 }
   0x7   : > { %p151_p3 = scmp.ne.s32.totalorder %s737_s19, %s733_s18  ;;  %p152_p4 = scmp.eq.s32.totalorder %s575_s23, 1 }
   0x8   : > { %s815_s27 = scalar_select %p133_p1, %s741_s20, %s135_s25  }
   0x9   : > { %p817_p5 = por %p146_p2, %p145_p0  ;;  %p821_p6 = por %p152_p4, %p151_p3 }
   0xa   : > { %p578_p7 = scmp.ge.s32.totalorder %s745_s21, 1  ;;  %p191_p8 = scmp.lt.s32.totalorder %s745_s21, 3 }
   0xc   : > { %p192_p9 = pnand %p578_p7, %p191_p8 }
   0xd   : > { %s580_s9 = sshll.u32 (!%p192_p9), %s800_s22, 4  ;;  %s216_s30 = sand.u32 (!%p192_p9), 1, %s737_s19  }
   0xe   : > { %195 = sbr.rel (%p192_p9) target bundleno = 401 (0x191), region = 40  ;;  %p220_p10 = scmp.lt.s32.totalorder (!%p192_p9), %s580_s9, 31 }
   0xf   : > { %s579_s8 = sshll.u32 (!%p192_p9), %s216_s30, 7  ;;  %s603_s10 = sshll.u32 (!%p192_p9), %s800_s22, 7 }
  0x10   : > { %s509_s13 = scalar_lea.hbm (!%p192_p9), %s1009_s5, %s603_s10  ;;  %s498_s16 = scalar_lea.sflag (!%p192_p9), [#allocation3], %s216_s30 }
  0x11   : > { %s512_s15 = sshll.u32 (!%p192_p9), %s509_s13, 4  ;;  %s703_s26 = scalar_lea.hbm (!%p192_p9), %s1009_s5, 256  ;;  %s513_s15 = int_to_ptr.hbm [resolvable:$true] %s512_s15 }
  0x12   : > { %s697_s23 = sshra.s32 (!%p192_p9), %s513_s15, 4  ;;  %s698_s23 = int_to_ptr.hbm [resolvable:$true] %s697_s23 }
  0x13   : > { %v245_v0 = vld [vmem:[%s1005_s1 + $0x18] sm:$0xff]  ;;  %v244_v1 = vld [vmem:[%s1005_s1 + $0x10] sm:$0xff]  ;;  %v243_v2 = vld [vmem:[%s1005_s1 + $0x8] sm:$0xff]  ;;  %s1017_s9 = smov (!%p220_p10, %s580_s9), 31  ;;  %vm250_vm0 = vcmask 261120   ;;  %s699_s22 = scalar_lea.hbm %s698_s23, 128 }
  0x14   : > { %311 = vmatpush.msra.mxu0 %v245_v0  ;;  %604 = vmatpush.msra.mxu3 %v245_v0  ;;  %v242_v3 = vld [vmem:[%s1005_s1] sm:$0xff]  ;;  %s581_s14 = sshll.u32 %s1017_s9, 3  ;;  %v395_v13 = vld [vmem:[%s1007_s3 + $0x78] sm:$0xff]  ;;  %v394_v14 = vld [vmem:[%s1007_s3 + $0x70] sm:$0xff]  ;;  %s937_s9 = scalar_lea.vmem [#allocation2], %s579_s8 }
  0x15   : > { %s843_s17 = scalar_lea.vmem %s1004_s0, %s581_s14  ;;  %400 = vmatpush.msra.mxu1 %v395_v13  ;;  %608 = vmatpush.msra.mxu2 %v395_v13  ;;  %v393_v15 = vld [vmem:[%s1007_s3 + $0x68] sm:$0xff]  ;;  %v392_v17 = vld [vmem:[%s1007_s3 + $0x60] sm:$0xff]  ;;  %v391_v19 = vld [vmem:[%s1007_s3 + $0x58] sm:$0xff]  ;;  %s510_s14 = sshll.u32 %s937_s9, 4  ;;  %s511_s14 = int_to_ptr.vmem [resolvable:$true] %s510_s14 }
  0x16   : > { %312 = vmatpush.msra.mxu0 %v244_v1  ;;  %605 = vmatpush.msra.mxu3 %v244_v1  ;;  %v226_v4 = vld [vmem:[%s843_s17] sm:$0xff]  ;;  %v227_v5 = vld [vmem:[%s843_s17 + $0x8] sm:$0xff]  ;;  %v228_v6 = vld [vmem:[%s843_s17 + $0x10] sm:$0xff]  ;;  %p700_p11 = scmp.ne.s32.totalorder %s698_s23, %s699_s22  ;;  %p704_p0 = scmp.lt.s32.totalorder %s698_s23, %s1009_s5 }
  0x17   : > { %v229_v7 = vld [vmem:[%s843_s17 + $0x18] sm:$0xff]  ;;  %v236_v8 = vld [vmem:[%s843_s17 + $0x50] sm:$0xff]  ;;  %v230_v9 = vld [vmem:[%s843_s17 + $0x20] sm:$0xff]  ;;  %401 = vmatpush.msra.mxu1 %v394_v14  ;;  %610 = vmatpush.msra.mxu2 %v394_v14  ;;  %p705_p1 = scmp.lt.s32.totalorder %s703_s26, %s699_s22 }
  0x18   : > { %313 = vmatpush.msra.mxu0 %v243_v2  ;;  %606 = vmatpush.msra.mxu3 %v243_v2  ;;  %v237_v10 = vld [vmem:[%s843_s17 + $0x58] sm:$0xff]  ;;  %v231_v11 = vld [vmem:[%s843_s17 + $0x28] sm:$0xff]  ;;  %v238_v12 = vld [vmem:[%s843_s17 + $0x60] sm:$0xff]  ;;  %p701_p12 = pnand %p700_p11, %p817_p5 }
  0x19   : > { %v232_v16 = vld [vmem:[%s843_s17 + $0x30] sm:$0xff]  ;;  %v239_v18 = vld [vmem:[%s843_s17 + $0x68] sm:$0xff]  ;;  %402 = vmatpush.msra.mxu1 %v393_v15  ;;  %612 = vmatpush.msra.mxu2 %v393_v15  ;;  %v233_v22 = vld [vmem:[%s843_s17 + $0x38] sm:$0xff]  ;;  %p706_p2 = por %p705_p1, %p704_p0 }
  0x1a   : > { %314 = vmatpush.msra.mxu0 %v242_v3  ;;  %607 = vmatpush.msra.mxu3 %v242_v3  ;;  %v390_v20 = vld [vmem:[%s1007_s3 + $0x50] sm:$0xff]  ;;  %v389_v21 = vld [vmem:[%s1007_s3 + $0x48] sm:$0xff]  ;;  %v388_v23 = vld [vmem:[%s1007_s3 + $0x40] sm:$0xff]  ;;  %p702_p13 = pneg %p701_p12 }
  0x1b   : > { %582 = vmatmul.msk.f32.vlgmr.msra.gmra.mxu0 %vm250_vm0, %v226_v4  ;;  %592 = vmatmul.msk.f32.vlgmr.msra.gmra.mxu3 %vm250_vm0, %v236_v8  ;;  %v240_v24 = vld [vmem:[%s843_s17 + $0x70] sm:$0xff]  ;;  %v387_v25 = vld [vmem:[%s1007_s3 + $0x38] sm:$0xff]  ;;  %v385_v27 = vld [vmem:[%s1007_s3 + $0x28] sm:$0xff] }
  0x1c   : > { %609 = vmatpush.msrb.mxu3 %v395_v13  ;;  %403 = vmatpush.msra.mxu1 %v392_v17  ;;  %v386_v26 = vld [vmem:[%s1007_s3 + $0x30] sm:$0xff]  ;;  %v234_v28 = vld [vmem:[%s843_s17 + $0x40] sm:$0xff]  ;;  %v241_v30 = vld [vmem:[%s843_s17 + $0x78] sm:$0xff]  ;;  %p707_p3 = pnand %p706_p2, %p702_p13 }
  0x1d   : > { %614 = vmatpush.msra.mxu2 %v392_v17  ;;  %v384_v29 = vld [vmem:[%s1007_s3 + $0x20] sm:$0xff]  ;;  %v383_v31 = vld [vmem:[%s1007_s3 + $0x18] sm:$0xff]  ;;  %v235_v32 = vld [vmem:[%s843_s17 + $0x48] sm:$0xff] }
  0x1e   : > { %611 = vmatpush.msrb.mxu3 %v394_v14  ;;  %404 = vmatpush.msra.mxu1 %v391_v19  ;;  %v382_v33 = vld [vmem:[%s1007_s3 + $0x10] sm:$0xff]  ;;  %v381_v34 = vld [vmem:[%s1007_s3 + $0x8] sm:$0xff]  ;;  %v380_v35 = vld [vmem:[%s1007_s3] sm:$0xff] }
  0x1f   : > { %616 = vmatpush.msra.mxu2 %v391_v19  ;;  %v681_v36 = vld [vmem:[%s1006_s2] ss:$0 sm:$0xff] }
  0x20   : > { %613 = vmatpush.msrb.mxu3 %v393_v15  ;;  %405 = vmatpush.msra.mxu1 %v390_v20 }
  0x21   : > { %618 = vmatpush.msra.mxu2 %v390_v20 }
  0x22   : > { %615 = vmatpush.msrb.mxu3 %v392_v17  ;;  %406 = vmatpush.msra.mxu1 %v389_v21 }
  0x23   : > { %583 = vmatmul.msk.f32.gmra.mxu0 %vm250_vm0, %v227_v5  ;;  %593 = vmatmul.msk.f32.gmra.mxu3 %vm250_vm0, %v237_v10 }
  0x24   : > { %617 = vmatpush.msrb.mxu3 %v391_v19  ;;  %620 = vmatpush.msra.mxu2 %v389_v21 }
  0x25   : > { %407 = vmatpush.msra.mxu1 %v388_v23 }
  0x26   : > { %619 = vmatpush.msrb.mxu3 %v390_v20  ;;  %622 = vmatpush.msra.mxu2 %v388_v23 }
  0x27   : > { %408 = vmatpush.msra.mxu1 %v387_v25 }
  0x28   : > { %621 = vmatpush.msrb.mxu3 %v389_v21  ;;  %624 = vmatpush.msra.mxu2 %v387_v25  ;;  %v932_v21 = vld [vmem:[%s1008_s4] ss:$0 sm:$0xff] }
  0x29   : > { %409 = vmatpush.msra.mxu1 %v386_v26 }
  0x2a   : > { %623 = vmatpush.msrb.mxu3 %v388_v23  ;;  %626 = vmatpush.msra.mxu2 %v386_v26 }
  0x2b   : > { %584 = vmatmul.msk.f32.gmra.mxu0 %vm250_vm0, %v228_v6  ;;  %594 = vmatmul.msk.f32.gmra.mxu3 %vm250_vm0, %v238_v12 }
  0x2c   : > { %410 = vmatpush.msra.mxu1 %v385_v27  ;;  %625 = vmatpush.msrb.mxu3 %v387_v25 }
  0x2d   : > { %628 = vmatpush.msra.mxu2 %v385_v27 }
  0x2e   : > { %411 = vmatpush.msra.mxu1 %v384_v29  ;;  %627 = vmatpush.msrb.mxu3 %v386_v26 }
  0x2f   : > { %630 = vmatpush.msra.mxu2 %v384_v29 }
  0x30   : > { %412 = vmatpush.msra.mxu1 %v383_v31  ;;  %629 = vmatpush.msrb.mxu3 %v385_v27 }
  0x31   : > { %632 = vmatpush.msra.mxu2 %v383_v31 }
  0x32   : > { %631 = vmatpush.msrb.mxu3 %v384_v29  ;;  %413 = vmatpush.msra.mxu1 %v382_v33 }
  0x33   : > { %585 = vmatmul.msk.f32.gmra.mxu0 %vm250_vm0, %v229_v7  ;;  %595 = vmatmul.msk.f32.gmra.mxu3 %vm250_vm0, %v239_v18 }
  0x34   : > { %633 = vmatpush.msrb.mxu3 %v383_v31  ;;  %634 = vmatpush.msra.mxu2 %v382_v33 }
  0x35   : > { %414 = vmatpush.msra.mxu1 %v381_v34 }
  0x36   : > { %635 = vmatpush.msrb.mxu3 %v382_v33  ;;  %636 = vmatpush.msra.mxu2 %v381_v34 }
  0x37   : > { %415 = vmatpush.msra.mxu1 %v380_v35 }
  0x38   : > { %637 = vmatpush.msrb.mxu3 %v381_v34  ;;  %638 = vmatpush.msra.mxu2 %v380_v35 }
  0x3a   : > { %639 = vmatpush.msrb.mxu3 %v380_v35 }
  0x3b   : > { %586 = vmatmul.msk.f32.gmra.mxu0 %vm250_vm0, %v230_v9  ;;  %596 = vmatmul.msk.f32.gmra.mxu3 %vm250_vm0, %v240_v24 }
  0x43   : > { %587 = vmatmul.msk.f32.gmra.mxu0 %vm250_vm0, %v231_v11  ;;  %597 = vmatmul.msk.f32.gmra.mxu3 %vm250_vm0, %v241_v30 }
  0x4b   : > { %588 = vmatmul.msk.f32.gmra.mxu0 %vm250_vm0, %v232_v16 }
  0x53   : > { %589 = vmatmul.msk.f32.gmra.mxu0 %vm250_vm0, %v233_v22 }
  0x5b   : > { %590 = vmatmul.msk.f32.gmra.mxu0 %vm250_vm0, %v234_v28 }
  0x63   : > { %591 = vmatmul.msk.f32.gmra.mxu0 %vm250_vm0, %v235_v32 }
  0x98   : > { %v316_v37 = vpop.f32.mrf.mxu0 }
  0x99   : > { %v317_v38 = vadd.f32 %v681_v36, %v316_v37 }
  0x9b   : > { %v364_v39 = vmax.f32 %v317_v38, 0.0 }
  0x9d   : > { %416 = vmatmul.f32.vlgmr.msra.gmra.mxu1 %v364_v39 }
  0x9e   : > { %v346_v50 = vpop.f32.mrf.mxu3 }
  0x9f   : > { %v347_v13 = vadd.f32 %v681_v36, %v346_v50 }
  0xa0   : > { %v319_v40 = vpop.f32.mrf.mxu0 }
  0xa1   : > { %v320_v41 = vadd.f32 %v681_v36, %v319_v40  ;;  %v374_v14 = vmax.f32 %v347_v13, 0.0 }
  0xa3   : > { %v365_v42 = vmax.f32 %v320_v41, 0.0 }
  0xa5   : > { %419 = vmatmul.f32.gmra.mxu1 %v365_v42 }
  0xa6   : > { %v349_v54 = vpop.f32.mrf.mxu3 }
  0xa7   : > { %v350_v15 = vadd.f32 %v681_v36, %v349_v54 }
  0xa8   : > { %v322_v43 = vpop.f32.mrf.mxu0 }
  0xa9   : > { %v323_v44 = vadd.f32 %v681_v36, %v322_v43  ;;  %v375_v16 = vmax.f32 %v350_v15, 0.0 }
  0xab   : > { %v366_v45 = vmax.f32 %v323_v44, 0.0 }
  0xad   : > { %422 = vmatmul.f32.gmra.mxu1 %v366_v45 }
  0xae   : > { %v352_v58 = vpop.f32.mrf.mxu3 }
  0xaf   : > { %v353_v17 = vadd.f32 %v681_v36, %v352_v58 }
  0xb0   : > { %v325_v46 = vpop.f32.mrf.mxu0 }
  0xb1   : > { %v326_v47 = vadd.f32 %v681_v36, %v325_v46  ;;  %v376_v18 = vmax.f32 %v353_v17, 0.0 }
  0xb3   : > { %v367_v48 = vmax.f32 %v326_v47, 0.0 }
  0xb5   : > { %425 = vmatmul.f32.gmra.mxu1 %v367_v48 }
  0xb6   : > { %v355_v62 = vpop.f32.mrf.mxu3 }
  0xb7   : > { %v356_v19 = vadd.f32 %v681_v36, %v355_v62 }
  0xb8   : > { %v328_v49 = vpop.f32.mrf.mxu0 }
  0xb9   : > { %v329_v51 = vadd.f32 %v681_v36, %v328_v49  ;;  %v377_v20 = vmax.f32 %v356_v19, 0.0 }
  0xbb   : > { %v368_v52 = vmax.f32 %v329_v51, 0.0 }
  0xbd   : > { %428 = vmatmul.f32.gmra.mxu1 %v368_v52 }
  0xbe   : > { %v358_v2 = vpop.f32.mrf.mxu3 }
  0xbf   : > { %v359_v4 = vadd.f32 %v681_v36, %v358_v2 }
  0xc0   : > { %v331_v53 = vpop.f32.mrf.mxu0 }
  0xc1   : > { %v332_v55 = vadd.f32 %v681_v36, %v331_v53  ;;  %v378_v6 = vmax.f32 %v359_v4, 0.0 }
  0xc3   : > { %v369_v56 = vmax.f32 %v332_v55, 0.0  ;;  %458 = vmatmul.f32.vlgmr.msrb.gmra.mxu3 %v378_v6 }
  0xc5   : > { %431 = vmatmul.f32.gmra.mxu1 %v369_v56 }
  0xc6   : > { %v361_v8 = vpop.f32.mrf.mxu3 }
  0xc7   : > { %v362_v10 = vadd.f32 %v681_v36, %v361_v8 }
  0xc8   : > { %v334_v57 = vpop.f32.mrf.mxu0 }
  0xc9   : > { %v335_v59 = vadd.f32 %v681_v36, %v334_v57  ;;  %v379_v12 = vmax.f32 %v362_v10, 0.0 }
  0xcb   : > { %v370_v60 = vmax.f32 %v335_v59, 0.0  ;;  %461 = vmatmul.f32.gmra.mxu3 %v379_v12 }
  0xcd   : > { %434 = vmatmul.f32.gmra.mxu1 %v370_v60 }
  0xd0   : > { %v337_v61 = vpop.f32.mrf.mxu0 }
  0xd1   : > { %v338_v63 = vadd.f32 %v681_v36, %v337_v61 }
  0xd3   : > { %v371_v0 = vmax.f32 %v338_v63, 0.0 }
  0xd5   : > { %437 = vmatmul.f32.vlgmr.msra.gmra.mxu2 %v371_v0 }
  0xd8   : > { %v340_v1 = vpop.f32.mrf.mxu0 }
  0xd9   : > { %v341_v3 = vadd.f32 %v681_v36, %v340_v1 }
  0xdb   : > { %v372_v5 = vmax.f32 %v341_v3, 0.0 }
  0xdd   : > { %440 = vmatmul.f32.gmra.mxu2 %v372_v5 }
  0xe0   : > { %v343_v7 = vpop.f32.mrf.mxu0 }
  0xe1   : > { %v344_v9 = vadd.f32 %v681_v36, %v343_v7 }
  0xe3   : > { %v373_v11 = vmax.f32 %v344_v9, 0.0 }
  0xe5   : > { %443 = vmatmul.f32.gmra.mxu2 %v373_v11 }
  0xed   : > { %446 = vmatmul.f32.gmra.mxu2 %v374_v14 }
  0xf5   : > { %449 = vmatmul.f32.gmra.mxu2 %v375_v16 }
  0xfd   : > { %452 = vmatmul.f32.gmra.mxu2 %v376_v18 }
 0x105   : > { %455 = vmatmul.f32.gmra.mxu2 %v377_v20 }
 0x11a   : > { %v417_v22 = vpop.f32.mrf.mxu1 }
 0x11b   : > { %v418_v23 = vadd.f32 %v932_v21, %v417_v22 }
 0x11d   : > { %v465_v24 = vmax.f32 %v418_v23, 0.0 }
 0x11f   : > { %481 = vst [vmem:[%s937_s9] sm:$0xff] %v465_v24 }
 0x122   : > { %v420_v25 = vpop.f32.mrf.mxu1 }
 0x123   : > { %v421_v26 = vadd.f32 %v932_v21, %v420_v25 }
 0x125   : > { %v466_v27 = vmax.f32 %v421_v26, 0.0 }
 0x127   : > { %482 = vst [vmem:[%s937_s9 + $0x8] sm:$0xff] %v466_v27 }
 0x12a   : > { %v423_v28 = vpop.f32.mrf.mxu1 }
 0x12b   : > { %v424_v29 = vadd.f32 %v932_v21, %v423_v28 }
 0x12d   : > { %v467_v30 = vmax.f32 %v424_v29, 0.0 }
 0x12f   : > { %483 = vst [vmem:[%s937_s9 + $0x10] sm:$0xff] %v467_v30 }
 0x132   : > { %v426_v31 = vpop.f32.mrf.mxu1 }
 0x133   : > { %v427_v32 = vadd.f32 %v932_v21, %v426_v31 }
 0x135   : > { %v468_v33 = vmax.f32 %v427_v32, 0.0 }
 0x137   : > { %484 = vst [vmem:[%s937_s9 + $0x18] sm:$0xff] %v468_v33 }
 0x13a   : > { %v429_v34 = vpop.f32.mrf.mxu1 }
 0x13b   : > { %v430_v35 = vadd.f32 %v932_v21, %v429_v34 }
 0x13d   : > { %v469_v36 = vmax.f32 %v430_v35, 0.0 }
 0x13f   : > { %485 = vst [vmem:[%s937_s9 + $0x20] sm:$0xff] %v469_v36 }
 0x142   : > { %v432_v37 = vpop.f32.mrf.mxu1 }
 0x143   : > { %v433_v38 = vadd.f32 %v932_v21, %v432_v37 }
 0x145   : > { %v470_v39 = vmax.f32 %v433_v38, 0.0 }
 0x146   : > { %v459_v47 = vpop.f32.mrf.mxu3 }
 0x147   : > { %486 = vst [vmem:[%s937_s9 + $0x28] sm:$0xff] %v470_v39  ;;  %v460_v49 = vadd.f32 %v932_v21, %v459_v47 }
 0x149   : > { %v479_v51 = vmax.f32 %v460_v49, 0.0 }
 0x14a   : > { %v435_v40 = vpop.f32.mrf.mxu1 }
 0x14b   : > { %v436_v41 = vadd.f32 %v932_v21, %v435_v40  ;;  %495 = vst [vmem:[%s937_s9 + $0x70] sm:$0xff] %v479_v51 }
 0x14d   : > { %v471_v42 = vmax.f32 %v436_v41, 0.0 }
 0x14e   : > { %v462_v53 = vpop.f32.mrf.mxu3 }
 0x14f   : > { %487 = vst [vmem:[%s937_s9 + $0x30] sm:$0xff] %v471_v42  ;;  %v463_v55 = vadd.f32 %v932_v21, %v462_v53 }
 0x151   : > { %v480_v57 = vmax.f32 %v463_v55, 0.0 }
 0x153   : > { %496 = vst [vmem:[%s937_s9 + $0x78] sm:$0xff] %v480_v57 }
 0x158   : > { %v438_v43 = vpop.f32.mrf.mxu2 }
 0x159   : > { %v439_v44 = vadd.f32 %v932_v21, %v438_v43 }
 0x15b   : > { %v472_v45 = vmax.f32 %v439_v44, 0.0 }
 0x15d   : > { %488 = vst [vmem:[%s937_s9 + $0x38] sm:$0xff] %v472_v45 }
 0x160   : > { %v441_v46 = vpop.f32.mrf.mxu2 }
 0x161   : > { %v442_v48 = vadd.f32 %v932_v21, %v441_v46 }
 0x163   : > { %v473_v50 = vmax.f32 %v442_v48, 0.0 }
 0x165   : > { %489 = vst [vmem:[%s937_s9 + $0x40] sm:$0xff] %v473_v50 }
 0x168   : > { %v444_v52 = vpop.f32.mrf.mxu2 }
 0x169   : > { %v445_v54 = vadd.f32 %v932_v21, %v444_v52 }
 0x16b   : > { %v474_v56 = vmax.f32 %v445_v54, 0.0 }
 0x16d   : > { %490 = vst [vmem:[%s937_s9 + $0x48] sm:$0xff] %v474_v56 }
 0x170   : > { %v447_v58 = vpop.f32.mrf.mxu2 }
 0x171   : > { %v448_v59 = vadd.f32 %v932_v21, %v447_v58 }
 0x173   : > { %v475_v60 = vmax.f32 %v448_v59, 0.0 }
 0x175   : > { %491 = vst [vmem:[%s937_s9 + $0x50] sm:$0xff] %v475_v60 }
 0x178   : > { %v450_v61 = vpop.f32.mrf.mxu2 }
 0x179   : > { %v451_v62 = vadd.f32 %v932_v21, %v450_v61 }
 0x17b   : > { %v476_v63 = vmax.f32 %v451_v62, 0.0 }
 0x17d   : > { %492 = vst [vmem:[%s937_s9 + $0x58] sm:$0xff] %v476_v63 }
 0x180   : > { %v453_v0 = vpop.f32.mrf.mxu2 }
 0x181   : > { %v454_v1 = vadd.f32 %v932_v21, %v453_v0 }
 0x183   : > { %v477_v2 = vmax.f32 %v454_v1, 0.0 }
 0x185   : > { %493 = vst [vmem:[%s937_s9 + $0x60] sm:$0xff] %v477_v2 }
 0x188   : > { %v456_v3 = vpop.f32.mrf.mxu2 }
 0x189   : > { %v457_v4 = vadd.f32 %v932_v21, %v456_v3 }
 0x18b   : > { %v478_v5 = vmax.f32 %v457_v4, 0.0 }
 0x18d   : > { %494 = vst [vmem:[%s937_s9 + $0x68] sm:$0xff] %v478_v5 }
 0x18e   : > { %710 = shalt.err (!%p707_p3)
}
 0x18f   : > { %s747_s30 = smov 128   ;;  %s748_s8 = smov 8  }
 0x190   : > { %640 = dma.vmem_to_hbm [thread:$0]  (%p817_p5), %s511_s14, 2048, %s513_s15, %s498_s16, %s747_s30, %s747_s30, %s748_s8  }
 0x191 PF: > { %p646_p4 = scmp.ge.s32.totalorder %s745_s21, 2  ;;  %s527_s9 = sand.u32 1, %s733_s18  }
 0x192   : > { %s528_s10 = scalar_lea.sflag [#allocation3], %s527_s9 }
 0x193   : > { %p643_p7 = pnand %p646_p4, %p821_p6 }
 0x195   : > { %p644_p8 = pneg %p643_p7 }
 0x197   : > { %728 = dma.done.wait (%p644_p8), %s528_s10, 2048  }
 0x198   : > { %730 = vsyncadd (%p644_p8), %s528_s10, 4294965248  ;;  %p15_p9 = scmp.ge.s32.totalorder %s804_s24, 4   ;;  %s1012_s18 = smov %s737_s19 }
 0x199   : > { %s1013_s19 = smov %s741_s20  ;;  %s1014_s20 = smov %s815_s27 }
 0x19a   : > { %s1015_s21 = smov %s804_s24  ;;  %17 = sbr.rel (!%p15_p9) target bundleno = 3 (0x3), region = 75 }
 0x19f   :  { %534 = vsyncpa [#allocation3], 1 }
 0x1a0   :  { %536 = vsyncpa [#allocation3 + $0x1], 1 }

// kernel: tpu_custom_call.1
= control target key start
LH: loop header
LB: loop body
LE: loop exit
PB: predicated region body
PF: predicated region fallthrough
CT: control target
= control target key end

     0   :  { %10 = vsyncpa [#allocation3], 0  ;;  %s1004_s0 = inlined_call_operand.vmem [shape: f32[256,32], index: 0, kind: input, shape index: {}]   ;;  %s1005_s1 = inlined_call_operand.vmem [shape: f32[32,128], index: 1, kind: input, shape index: {}]   ;;  %s1006_s2 = inlined_call_operand.vmem [shape: f32[1,128], index: 2, kind: input, shape index: {}]   ;;  %s1007_s3 = inlined_call_operand.vmem [shape: f32[128,128], index: 3, kind: input, shape index: {}]   ;;  %s1008_s4 = inlined_call_operand.vmem [shape: f32[1,128], index: 4, kind: input, shape index: {}]   ;;  %s1009_s5 = inlined_call_operand.hbm [shape: f32[256,128], index: 5, kind: output, shape index: {}]  }
   0x1   :  { %12 = vsyncpa [#allocation3 + $0x1], 0  ;;  %s779_s18 = smov 0   ;;  %s781_s19 = smov 0  }
   0x2   :  { %s783_s20 = smov 0   ;;  %s785_s21 = smov 0  }
   0x3 LB: > { %s800_s22 = sadd.s32 4294967295, %s745_s21   ;;  %s575_s23 = sadd.s32 4294967294, %s745_s21   ;;  %s745_s21 = sphi %s785_s21, %s1015_s21   ;;  %s741_s20 = sphi %s783_s20, %s1014_s20   ;;  %s737_s19 = sphi %s781_s19, %s1013_s19   ;;  %s733_s18 = sphi %s779_s18, %s1012_s18  }
   0x4   : > { %s804_s24 = sadd.s32 1, %s745_s21   ;;  %s135_s25 = sadd.s32 1, %s741_s20 }
   0x5   : > { %s132_s26 = ssub.s32 %s745_s21, %s804_s24  ;;  %p145_p0 = scmp.ne.s32.totalorder %s741_s20, %s737_s19 }
   0x6   : > { %p133_p1 = scmp.eq.s32.totalorder %s132_s26, 0  ;;  %p146_p2 = scmp.eq.s32.totalorder %s800_s22, 1 }
   0x7   : > { %p151_p3 = scmp.ne.s32.totalorder %s737_s19, %s733_s18  ;;  %p152_p4 = scmp.eq.s32.totalorder %s575_s23, 1 }
   0x8   : > { %s815_s27 = scalar_select %p133_p1, %s741_s20, %s135_s25  }
   0x9   : > { %p817_p5 = por %p146_p2, %p145_p0  ;;  %p821_p6 = por %p152_p4, %p151_p3 }
   0xa   : > { %p578_p7 = scmp.ge.s32.totalorder %s745_s21, 1  ;;  %p191_p8 = scmp.lt.s32.totalorder %s745_s21, 3 }
   0xc   : > { %p192_p9 = pnand %p578_p7, %p191_p8 }
   0xd   : > { %s580_s9 = sshll.u32 (!%p192_p9), %s800_s22, 4  ;;  %s216_s30 = sand.u32 (!%p192_p9), 1, %s737_s19  }
   0xe   : > { %195 = sbr.rel (%p192_p9) target bundleno = 401 (0x191), region = 40  ;;  %p220_p10 = scmp.lt.s32.totalorder (!%p192_p9), %s580_s9, 31 }
   0xf   : > { %s579_s8 = sshll.u32 (!%p192_p9), %s216_s30, 7  ;;  %s603_s10 = sshll.u32 (!%p192_p9), %s800_s22, 7 }
  0x10   : > { %s509_s13 = scalar_lea.hbm (!%p192_p9), %s1009_s5, %s603_s10  ;;  %s498_s16 = scalar_lea.sflag (!%p192_p9), [#allocation3], %s216_s30 }
  0x11   : > { %s512_s15 = sshll.u32 (!%p192_p9), %s509_s13, 4  ;;  %s703_s26 = scalar_lea.hbm (!%p192_p9), %s1009_s5, 256  ;;  %s513_s15 = int_to_ptr.hbm [resolvable:$true] %s512_s15 }
  0x12   : > { %s697_s23 = sshra.s32 (!%p192_p9), %s513_s15, 4  ;;  %s698_s23 = int_to_ptr.hbm [resolvable:$true] %s697_s23 }
  0x13   : > { %v245_v0 = vld [vmem:[%s1005_s1 + $0x18] sm:$0xff]  ;;  %v244_v1 = vld [vmem:[%s1005_s1 + $0x10] sm:$0xff]  ;;  %v243_v2 = vld [vmem:[%s1005_s1 + $0x8] sm:$0xff]  ;;  %s1017_s9 = smov (!%p220_p10, %s580_s9), 31  ;;  %vm250_vm0 = vcmask 261120   ;;  %s699_s22 = scalar_lea.hbm %s698_s23, 128 }
  0x14   : > { %311 = vmatpush.msra.mxu0 %v245_v0  ;;  %604 = vmatpush.msra.mxu3 %v245_v0  ;;  %v242_v3 = vld [vmem:[%s1005_s1] sm:$0xff]  ;;  %s581_s14 = sshll.u32 %s1017_s9, 3  ;;  %v395_v13 = vld [vmem:[%s1007_s3 + $0x78] sm:$0xff]  ;;  %v394_v14 = vld [vmem:[%s1007_s3 + $0x70] sm:$0xff]  ;;  %s937_s9 = scalar_lea.vmem [#allocation2], %s579_s8 }
  0x15   : > { %s843_s17 = scalar_lea.vmem %s1004_s0, %s581_s14  ;;  %400 = vmatpush.msra.mxu1 %v395_v13  ;;  %608 = vmatpush.msra.mxu2 %v395_v13  ;;  %v393_v15 = vld [vmem:[%s1007_s3 + $0x68] sm:$0xff]  ;;  %v392_v17 = vld [vmem:[%s1007_s3 + $0x60] sm:$0xff]  ;;  %v391_v19 = vld [vmem:[%s1007_s3 + $0x58] sm:$0xff]  ;;  %s510_s14 = sshll.u32 %s937_s9, 4  ;;  %s511_s14 = int_to_ptr.vmem [resolvable:$true] %s510_s14 }
  0x16   : > { %312 = vmatpush.msra.mxu0 %v244_v1  ;;  %605 = vmatpush.msra.mxu3 %v244_v1  ;;  %v226_v4 = vld [vmem:[%s843_s17] sm:$0xff]  ;;  %v227_v5 = vld [vmem:[%s843_s17 + $0x8] sm:$0xff]  ;;  %v228_v6 = vld [vmem:[%s843_s17 + $0x10] sm:$0xff]  ;;  %p700_p11 = scmp.ne.s32.totalorder %s698_s23, %s699_s22  ;;  %p704_p0 = scmp.lt.s32.totalorder %s698_s23, %s1009_s5 }
  0x17   : > { %v229_v7 = vld [vmem:[%s843_s17 + $0x18] sm:$0xff]  ;;  %v236_v8 = vld [vmem:[%s843_s17 + $0x50] sm:$0xff]  ;;  %v230_v9 = vld [vmem:[%s843_s17 + $0x20] sm:$0xff]  ;;  %401 = vmatpush.msra.mxu1 %v394_v14  ;;  %610 = vmatpush.msra.mxu2 %v394_v14  ;;  %p705_p1 = scmp.lt.s32.totalorder %s703_s26, %s699_s22 }
  0x18   : > { %313 = vmatpush.msra.mxu0 %v243_v2  ;;  %606 = vmatpush.msra.mxu3 %v243_v2  ;;  %v237_v10 = vld [vmem:[%s843_s17 + $0x58] sm:$0xff]  ;;  %v231_v11 = vld [vmem:[%s843_s17 + $0x28] sm:$0xff]  ;;  %v238_v12 = vld [vmem:[%s843_s17 + $0x60] sm:$0xff]  ;;  %p701_p12 = pnand %p700_p11, %p817_p5 }
  0x19   : > { %v232_v16 = vld [vmem:[%s843_s17 + $0x30] sm:$0xff]  ;;  %v239_v18 = vld [vmem:[%s843_s17 + $0x68] sm:$0xff]  ;;  %402 = vmatpush.msra.mxu1 %v393_v15  ;;  %612 = vmatpush.msra.mxu2 %v393_v15  ;;  %v233_v22 = vld [vmem:[%s843_s17 + $0x38] sm:$0xff]  ;;  %p706_p2 = por %p705_p1, %p704_p0 }
  0x1a   : > { %314 = vmatpush.msra.mxu0 %v242_v3  ;;  %607 = vmatpush.msra.mxu3 %v242_v3  ;;  %v390_v20 = vld [vmem:[%s1007_s3 + $0x50] sm:$0xff]  ;;  %v389_v21 = vld [vmem:[%s1007_s3 + $0x48] sm:$0xff]  ;;  %v388_v23 = vld [vmem:[%s1007_s3 + $0x40] sm:$0xff]  ;;  %p702_p13 = pneg %p701_p12 }
  0x1b   : > { %582 = vmatmul.msk.f32.vlgmr.msra.gmra.mxu0 %vm250_vm0, %v226_v4  ;;  %592 = vmatmul.msk.f32.vlgmr.msra.gmra.mxu3 %vm250_vm0, %v236_v8  ;;  %v240_v24 = vld [vmem:[%s843_s17 + $0x70] sm:$0xff]  ;;  %v387_v25 = vld [vmem:[%s1007_s3 + $0x38] sm:$0xff]  ;;  %v385_v27 = vld [vmem:[%s1007_s3 + $0x28] sm:$0xff] }
  0x1c   : > { %609 = vmatpush.msrb.mxu3 %v395_v13  ;;  %403 = vmatpush.msra.mxu1 %v392_v17  ;;  %v386_v26 = vld [vmem:[%s1007_s3 + $0x30] sm:$0xff]  ;;  %v234_v28 = vld [vmem:[%s843_s17 + $0x40] sm:$0xff]  ;;  %v241_v30 = vld [vmem:[%s843_s17 + $0x78] sm:$0xff]  ;;  %p707_p3 = pnand %p706_p2, %p702_p13 }
  0x1d   : > { %614 = vmatpush.msra.mxu2 %v392_v17  ;;  %v384_v29 = vld [vmem:[%s1007_s3 + $0x20] sm:$0xff]  ;;  %v383_v31 = vld [vmem:[%s1007_s3 + $0x18] sm:$0xff]  ;;  %v235_v32 = vld [vmem:[%s843_s17 + $0x48] sm:$0xff] }
  0x1e   : > { %611 = vmatpush.msrb.mxu3 %v394_v14  ;;  %404 = vmatpush.msra.mxu1 %v391_v19  ;;  %v382_v33 = vld [vmem:[%s1007_s3 + $0x10] sm:$0xff]  ;;  %v381_v34 = vld [vmem:[%s1007_s3 + $0x8] sm:$0xff]  ;;  %v380_v35 = vld [vmem:[%s1007_s3] sm:$0xff] }
  0x1f   : > { %616 = vmatpush.msra.mxu2 %v391_v19  ;;  %v681_v36 = vld [vmem:[%s1006_s2] ss:$0 sm:$0xff] }
  0x20   : > { %613 = vmatpush.msrb.mxu3 %v393_v15  ;;  %405 = vmatpush.msra.mxu1 %v390_v20 }
  0x21   : > { %618 = vmatpush.msra.mxu2 %v390_v20 }
  0x22   : > { %615 = vmatpush.msrb.mxu3 %v392_v17  ;;  %406 = vmatpush.msra.mxu1 %v389_v21 }
  0x23   : > { %583 = vmatmul.msk.f32.gmra.mxu0 %vm250_vm0, %v227_v5  ;;  %593 = vmatmul.msk.f32.gmra.mxu3 %vm250_vm0, %v237_v10 }
  0x24   : > { %617 = vmatpush.msrb.mxu3 %v391_v19  ;;  %620 = vmatpush.msra.mxu2 %v389_v21 }
  0x25   : > { %407 = vmatpush.msra.mxu1 %v388_v23 }
  0x26   : > { %619 = vmatpush.msrb.mxu3 %v390_v20  ;;  %622 = vmatpush.msra.mxu2 %v388_v23 }
  0x27   : > { %408 = vmatpush.msra.mxu1 %v387_v25 }
  0x28   : > { %621 = vmatpush.msrb.mxu3 %v389_v21  ;;  %624 = vmatpush.msra.mxu2 %v387_v25  ;;  %v932_v21 = vld [vmem:[%s1008_s4] ss:$0 sm:$0xff] }
  0x29   : > { %409 = vmatpush.msra.mxu1 %v386_v26 }
  0x2a   : > { %623 = vmatpush.msrb.mxu3 %v388_v23  ;;  %626 = vmatpush.msra.mxu2 %v386_v26 }
  0x2b   : > { %584 = vmatmul.msk.f32.gmra.mxu0 %vm250_vm0, %v228_v6  ;;  %594 = vmatmul.msk.f32.gmra.mxu3 %vm250_vm0, %v238_v12 }
  0x2c   : > { %410 = vmatpush.msra.mxu1 %v385_v27  ;;  %625 = vmatpush.msrb.mxu3 %v387_v25 }
  0x2d   : > { %628 = vmatpush.msra.mxu2 %v385_v27 }
  0x2e   : > { %411 = vmatpush.msra.mxu1 %v384_v29  ;;  %627 = vmatpush.msrb.mxu3 %v386_v26 }
  0x2f   : > { %630 = vmatpush.msra.mxu2 %v384_v29 }
  0x30   : > { %412 = vmatpush.msra.mxu1 %v383_v31  ;;  %629 = vmatpush.msrb.mxu3 %v385_v27 }
  0x31   : > { %632 = vmatpush.msra.mxu2 %v383_v31 }
  0x32   : > { %631 = vmatpush.msrb.mxu3 %v384_v29  ;;  %413 = vmatpush.msra.mxu1 %v382_v33 }
  0x33   : > { %585 = vmatmul.msk.f32.gmra.mxu0 %vm250_vm0, %v229_v7  ;;  %595 = vmatmul.msk.f32.gmra.mxu3 %vm250_vm0, %v239_v18 }
  0x34   : > { %633 = vmatpush.msrb.mxu3 %v383_v31  ;;  %634 = vmatpush.msra.mxu2 %v382_v33 }
  0x35   : > { %414 = vmatpush.msra.mxu1 %v381_v34 }
  0x36   : > { %635 = vmatpush.msrb.mxu3 %v382_v33  ;;  %636 = vmatpush.msra.mxu2 %v381_v34 }
  0x37   : > { %415 = vmatpush.msra.mxu1 %v380_v35 }
  0x38   : > { %637 = vmatpush.msrb.mxu3 %v381_v34  ;;  %638 = vmatpush.msra.mxu2 %v380_v35 }
  0x3a   : > { %639 = vmatpush.msrb.mxu3 %v380_v35 }
  0x3b   : > { %586 = vmatmul.msk.f32.gmra.mxu0 %vm250_vm0, %v230_v9  ;;  %596 = vmatmul.msk.f32.gmra.mxu3 %vm250_vm0, %v240_v24 }
  0x43   : > { %587 = vmatmul.msk.f32.gmra.mxu0 %vm250_vm0, %v231_v11  ;;  %597 = vmatmul.msk.f32.gmra.mxu3 %vm250_vm0, %v241_v30 }
  0x4b   : > { %588 = vmatmul.msk.f32.gmra.mxu0 %vm250_vm0, %v232_v16 }
  0x53   : > { %589 = vmatmul.msk.f32.gmra.mxu0 %vm250_vm0, %v233_v22 }
  0x5b   : > { %590 = vmatmul.msk.f32.gmra.mxu0 %vm250_vm0, %v234_v28 }
  0x63   : > { %591 = vmatmul.msk.f32.gmra.mxu0 %vm250_vm0, %v235_v32 }
  0x98   : > { %v316_v37 = vpop.f32.mrf.mxu0 }
  0x99   : > { %v317_v38 = vadd.f32 %v681_v36, %v316_v37 }
  0x9b   : > { %v364_v39 = vmax.f32 %v317_v38, 0.0 }
  0x9d   : > { %416 = vmatmul.f32.vlgmr.msra.gmra.mxu1 %v364_v39 }
  0x9e   : > { %v346_v50 = vpop.f32.mrf.mxu3 }
  0x9f   : > { %v347_v13 = vadd.f32 %v681_v36, %v346_v50 }
  0xa0   : > { %v319_v40 = vpop.f32.mrf.mxu0 }
  0xa1   : > { %v320_v41 = vadd.f32 %v681_v36, %v319_v40  ;;  %v374_v14 = vmax.f32 %v347_v13, 0.0 }
  0xa3   : > { %v365_v42 = vmax.f32 %v320_v41, 0.0 }
  0xa5   : > { %419 = vmatmul.f32.gmra.mxu1 %v365_v42 }
  0xa6   : > { %v349_v54 = vpop.f32.mrf.mxu3 }
  0xa7   : > { %v350_v15 = vadd.f32 %v681_v36, %v349_v54 }
  0xa8   : > { %v322_v43 = vpop.f32.mrf.mxu0 }
  0xa9   : > { %v323_v44 = vadd.f32 %v681_v36, %v322_v43  ;;  %v375_v16 = vmax.f32 %v350_v15, 0.0 }
  0xab   : > { %v366_v45 = vmax.f32 %v323_v44, 0.0 }
  0xad   : > { %422 = vmatmul.f32.gmra.mxu1 %v366_v45 }
  0xae   : > { %v352_v58 = vpop.f32.mrf.mxu3 }
  0xaf   : > { %v353_v17 = vadd.f32 %v681_v36, %v352_v58 }
  0xb0   : > { %v325_v46 = vpop.f32.mrf.mxu0 }
  0xb1   : > { %v326_v47 = vadd.f32 %v681_v36, %v325_v46  ;;  %v376_v18 = vmax.f32 %v353_v17, 0.0 }
  0xb3   : > { %v367_v48 = vmax.f32 %v326_v47, 0.0 }
  0xb5   : > { %425 = vmatmul.f32.gmra.mxu1 %v367_v48 }
  0xb6   : > { %v355_v62 = vpop.f32.mrf.mxu3 }
  0xb7   : > { %v356_v19 = vadd.f32 %v681_v36, %v355_v62 }
  0xb8   : > { %v328_v49 = vpop.f32.mrf.mxu0 }
  0xb9   : > { %v329_v51 = vadd.f32 %v681_v36, %v328_v49  ;;  %v377_v20 = vmax.f32 %v356_v19, 0.0 }
  0xbb   : > { %v368_v52 = vmax.f32 %v329_v51, 0.0 }
  0xbd   : > { %428 = vmatmul.f32.gmra.mxu1 %v368_v52 }
  0xbe   : > { %v358_v2 = vpop.f32.mrf.mxu3 }
  0xbf   : > { %v359_v4 = vadd.f32 %v681_v36, %v358_v2 }
  0xc0   : > { %v331_v53 = vpop.f32.mrf.mxu0 }
  0xc1   : > { %v332_v55 = vadd.f32 %v681_v36, %v331_v53  ;;  %v378_v6 = vmax.f32 %v359_v4, 0.0 }
  0xc3   : > { %v369_v56 = vmax.f32 %v332_v55, 0.0  ;;  %458 = vmatmul.f32.vlgmr.msrb.gmra.mxu3 %v378_v6 }
  0xc5   : > { %431 = vmatmul.f32.gmra.mxu1 %v369_v56 }
  0xc6   : > { %v361_v8 = vpop.f32.mrf.mxu3 }
  0xc7   : > { %v362_v10 = vadd.f32 %v681_v36, %v361_v8 }
  0xc8   : > { %v334_v57 = vpop.f32.mrf.mxu0 }
  0xc9   : > { %v335_v59 = vadd.f32 %v681_v36, %v334_v57  ;;  %v379_v12 = vmax.f32 %v362_v10, 0.0 }
  0xcb   : > { %v370_v60 = vmax.f32 %v335_v59, 0.0  ;;  %461 = vmatmul.f32.gmra.mxu3 %v379_v12 }
  0xcd   : > { %434 = vmatmul.f32.gmra.mxu1 %v370_v60 }
  0xd0   : > { %v337_v61 = vpop.f32.mrf.mxu0 }
  0xd1   : > { %v338_v63 = vadd.f32 %v681_v36, %v337_v61 }
  0xd3   : > { %v371_v0 = vmax.f32 %v338_v63, 0.0 }
  0xd5   : > { %437 = vmatmul.f32.vlgmr.msra.gmra.mxu2 %v371_v0 }
  0xd8   : > { %v340_v1 = vpop.f32.mrf.mxu0 }
  0xd9   : > { %v341_v3 = vadd.f32 %v681_v36, %v340_v1 }
  0xdb   : > { %v372_v5 = vmax.f32 %v341_v3, 0.0 }
  0xdd   : > { %440 = vmatmul.f32.gmra.mxu2 %v372_v5 }
  0xe0   : > { %v343_v7 = vpop.f32.mrf.mxu0 }
  0xe1   : > { %v344_v9 = vadd.f32 %v681_v36, %v343_v7 }
  0xe3   : > { %v373_v11 = vmax.f32 %v344_v9, 0.0 }
  0xe5   : > { %443 = vmatmul.f32.gmra.mxu2 %v373_v11 }
  0xed   : > { %446 = vmatmul.f32.gmra.mxu2 %v374_v14 }
  0xf5   : > { %449 = vmatmul.f32.gmra.mxu2 %v375_v16 }
  0xfd   : > { %452 = vmatmul.f32.gmra.mxu2 %v376_v18 }
 0x105   : > { %455 = vmatmul.f32.gmra.mxu2 %v377_v20 }
 0x11a   : > { %v417_v22 = vpop.f32.mrf.mxu1 }
 0x11b   : > { %v418_v23 = vadd.f32 %v932_v21, %v417_v22 }
 0x11d   : > { %v465_v24 = vmax.f32 %v418_v23, 0.0 }
 0x11f   : > { %481 = vst [vmem:[%s937_s9] sm:$0xff] %v465_v24 }
 0x122   : > { %v420_v25 = vpop.f32.mrf.mxu1 }
 0x123   : > { %v421_v26 = vadd.f32 %v932_v21, %v420_v25 }
 0x125   : > { %v466_v27 = vmax.f32 %v421_v26, 0.0 }
 0x127   : > { %482 = vst [vmem:[%s937_s9 + $0x8] sm:$0xff] %v466_v27 }
 0x12a   : > { %v423_v28 = vpop.f32.mrf.mxu1 }
 0x12b   : > { %v424_v29 = vadd.f32 %v932_v21, %v423_v28 }
 0x12d   : > { %v467_v30 = vmax.f32 %v424_v29, 0.0 }
 0x12f   : > { %483 = vst [vmem:[%s937_s9 + $0x10] sm:$0xff] %v467_v30 }
 0x132   : > { %v426_v31 = vpop.f32.mrf.mxu1 }
 0x133   : > { %v427_v32 = vadd.f32 %v932_v21, %v426_v31 }
 0x135   : > { %v468_v33 = vmax.f32 %v427_v32, 0.0 }
 0x137   : > { %484 = vst [vmem:[%s937_s9 + $0x18] sm:$0xff] %v468_v33 }
 0x13a   : > { %v429_v34 = vpop.f32.mrf.mxu1 }
 0x13b   : > { %v430_v35 = vadd.f32 %v932_v21, %v429_v34 }
 0x13d   : > { %v469_v36 = vmax.f32 %v430_v35, 0.0 }
 0x13f   : > { %485 = vst [vmem:[%s937_s9 + $0x20] sm:$0xff] %v469_v36 }
 0x142   : > { %v432_v37 = vpop.f32.mrf.mxu1 }
 0x143   : > { %v433_v38 = vadd.f32 %v932_v21, %v432_v37 }
 0x145   : > { %v470_v39 = vmax.f32 %v433_v38, 0.0 }
 0x146   : > { %v459_v47 = vpop.f32.mrf.mxu3 }
 0x147   : > { %486 = vst [vmem:[%s937_s9 + $0x28] sm:$0xff] %v470_v39  ;;  %v460_v49 = vadd.f32 %v932_v21, %v459_v47 }
 0x149   : > { %v479_v51 = vmax.f32 %v460_v49, 0.0 }
 0x14a   : > { %v435_v40 = vpop.f32.mrf.mxu1 }
 0x14b   : > { %v436_v41 = vadd.f32 %v932_v21, %v435_v40  ;;  %495 = vst [vmem:[%s937_s9 + $0x70] sm:$0xff] %v479_v51 }
 0x14d   : > { %v471_v42 = vmax.f32 %v436_v41, 0.0 }
 0x14e   : > { %v462_v53 = vpop.f32.mrf.mxu3 }
 0x14f   : > { %487 = vst [vmem:[%s937_s9 + $0x30] sm:$0xff] %v471_v42  ;;  %v463_v55 = vadd.f32 %v932_v21, %v462_v53 }
 0x151   : > { %v480_v57 = vmax.f32 %v463_v55, 0.0 }
 0x153   : > { %496 = vst [vmem:[%s937_s9 + $0x78] sm:$0xff] %v480_v57 }
 0x158   : > { %v438_v43 = vpop.f32.mrf.mxu2 }
 0x159   : > { %v439_v44 = vadd.f32 %v932_v21, %v438_v43 }
 0x15b   : > { %v472_v45 = vmax.f32 %v439_v44, 0.0 }
 0x15d   : > { %488 = vst [vmem:[%s937_s9 + $0x38] sm:$0xff] %v472_v45 }
 0x160   : > { %v441_v46 = vpop.f32.mrf.mxu2 }
 0x161   : > { %v442_v48 = vadd.f32 %v932_v21, %v441_v46 }
 0x163   : > { %v473_v50 = vmax.f32 %v442_v48, 0.0 }
 0x165   : > { %489 = vst [vmem:[%s937_s9 + $0x40] sm:$0xff] %v473_v50 }
 0x168   : > { %v444_v52 = vpop.f32.mrf.mxu2 }
 0x169   : > { %v445_v54 = vadd.f32 %v932_v21, %v444_v52 }
 0x16b   : > { %v474_v56 = vmax.f32 %v445_v54, 0.0 }
 0x16d   : > { %490 = vst [vmem:[%s937_s9 + $0x48] sm:$0xff] %v474_v56 }
 0x170   : > { %v447_v58 = vpop.f32.mrf.mxu2 }
 0x171   : > { %v448_v59 = vadd.f32 %v932_v21, %v447_v58 }
 0x173   : > { %v475_v60 = vmax.f32 %v448_v59, 0.0 }
 0x175   : > { %491 = vst [vmem:[%s937_s9 + $0x50] sm:$0xff] %v475_v60 }
 0x178   : > { %v450_v61 = vpop.f32.mrf.mxu2 }
 0x179   : > { %v451_v62 = vadd.f32 %v932_v21, %v450_v61 }
 0x17b   : > { %v476_v63 = vmax.f32 %v451_v62, 0.0 }
 0x17d   : > { %492 = vst [vmem:[%s937_s9 + $0x58] sm:$0xff] %v476_v63 }
 0x180   : > { %v453_v0 = vpop.f32.mrf.mxu2 }
 0x181   : > { %v454_v1 = vadd.f32 %v932_v21, %v453_v0 }
 0x183   : > { %v477_v2 = vmax.f32 %v454_v1, 0.0 }
 0x185   : > { %493 = vst [vmem:[%s937_s9 + $0x60] sm:$0xff] %v477_v2 }
 0x188   : > { %v456_v3 = vpop.f32.mrf.mxu2 }
 0x189   : > { %v457_v4 = vadd.f32 %v932_v21, %v456_v3 }
 0x18b   : > { %v478_v5 = vmax.f32 %v457_v4, 0.0 }
 0x18d   : > { %494 = vst [vmem:[%s937_s9 + $0x68] sm:$0xff] %v478_v5 }
 0x18e   : > { %710 = shalt.err (!%p707_p3)
}
 0x18f   : > { %s747_s30 = smov 128   ;;  %s748_s8 = smov 8  }
 0x190   : > { %640 = dma.vmem_to_hbm [thread:$0]  (%p817_p5), %s511_s14, 2048, %s513_s15, %s498_s16, %s747_s30, %s747_s30, %s748_s8  }
 0x191 PF: > { %p646_p4 = scmp.ge.s32.totalorder %s745_s21, 2  ;;  %s527_s9 = sand.u32 1, %s733_s18  }
 0x192   : > { %s528_s10 = scalar_lea.sflag [#allocation3], %s527_s9 }
 0x193   : > { %p643_p7 = pnand %p646_p4, %p821_p6 }
 0x195   : > { %p644_p8 = pneg %p643_p7 }
 0x197   : > { %728 = dma.done.wait (%p644_p8), %s528_s10, 2048  }
 0x198   : > { %730 = vsyncadd (%p644_p8), %s528_s10, 4294965248  ;;  %p15_p9 = scmp.ge.s32.totalorder %s804_s24, 4   ;;  %s1012_s18 = smov %s737_s19 }
 0x199   : > { %s1013_s19 = smov %s741_s20  ;;  %s1014_s20 = smov %s815_s27 }
 0x19a   : > { %s1015_s21 = smov %s804_s24  ;;  %17 = sbr.rel (!%p15_p9) target bundleno = 3 (0x3), region = 75 }
 0x19f   :  { %534 = vsyncpa [#allocation3], 1 }
 0x1a0   :  { %536 = vsyncpa [#allocation3 + $0x1], 1 }

</bundles_post_ra>
